<compile_context>
chip_gen: v5e
topology: v5e:2x2
jax: 0.10.0
libtpu: 0.0.40
codegen_flags: <defaults>
</compile_context>

<pallas_src>
from typing import NamedTuple

import jax
import jax.numpy as jnp
from jax.experimental import pallas as pl
from jax.experimental.pallas import tpu as pltpu


def _round_up(x, m):
    return (x + m - 1) // m * m


# ---------------------------------------------------------------------------
# Kernels.  grid = (m, f): m tiles token rows ("parallel"), f tiles d_ff
# ("arbitrary" -- reduction axis of the second matmul).  Per f step we load a
# fused [W1 | Wg] slab, compute both projections with one MXU matmul, apply
# SwiGLU, and accumulate the partial second matmul.
# ---------------------------------------------------------------------------

def _ffn_kernel_acc_in_out(x_ref, w1g_ref, b1g_ref, w2_ref, b2_ref, o_ref):
    """f32 output: accumulate directly into the resident output block."""
    f = pl.program_id(1)

    @pl.when(f == 0)
    def _init():
        o_ref[...] = jnp.zeros_like(o_ref)

    x = x_ref[...]                                              # (TM, Dp)
    hg = jnp.dot(x, w1g_ref[0], preferred_element_type=jnp.float32)
    hg = hg + b1g_ref[0]                                        # (TM, 2*TF)
    tf = hg.shape[-1] // 2
    h, g = hg[:, :tf], hg[:, tf:]
    gated = h * (g * jax.nn.sigmoid(g))                         # x_ff * SiLU(gate)
    o_ref[...] += jnp.dot(gated.astype(w2_ref.dtype), w2_ref[...],
                          preferred_element_type=jnp.float32)

    @pl.when(f == pl.num_programs(1) - 1)
    def _finalize():
        o_ref[...] = (o_ref[...] + b2_ref[...]).astype(o_ref.dtype)


def _ffn_kernel_scratch_acc(x_ref, w1g_ref, b1g_ref, w2_ref, b2_ref, o_ref,
                            acc_ref):
    """non-f32 output: accumulate in f32 VMEM scratch, cast once at finalize."""
    f = pl.program_id(1)

    @pl.when(f == 0)
    def _init():
        acc_ref[...] = jnp.zeros_like(acc_ref)

    x = x_ref[...]
    hg = jnp.dot(x, w1g_ref[0], preferred_element_type=jnp.float32)
    hg = hg + b1g_ref[0]
    tf = hg.shape[-1] // 2
    h, g = hg[:, :tf], hg[:, tf:]
    gated = h * (g * jax.nn.sigmoid(g))
    acc_ref[...] += jnp.dot(gated.astype(w2_ref.dtype), w2_ref[...],
                            preferred_element_type=jnp.float32)

    @pl.when(f == pl.num_programs(1) - 1)
    def _finalize():
        o_ref[...] = (acc_ref[...] + b2_ref[...]).astype(o_ref.dtype)


# ---------------------------------------------------------------------------
# Per-generation tiling defaults.
# ---------------------------------------------------------------------------

def _device_config():
    kind = ""
    try:
        kind = jax.devices()[0].device_kind.lower()
    except Exception:
        pass
    if "v7" in kind:
        # 64 MiB VMEM/TC is the binding constraint; TM=256 already sits near
        # the ~310 flop/byte HBM crossover.  Single-buffer the f-resident specs.
        return dict(tm=256, vmem=48 * 1024 * 1024, single_buffer=True)
    if "v6" in kind or "v5" in kind:
        # Crossover ~650 (v6e) / ~240 (v5e) flop per weight byte: TM=512 halves
        # weight re-streaming; 128 MiB physical VMEM holds the larger tiles.
        return dict(tm=512, vmem=96 * 1024 * 1024, single_buffer=False)
    # Unknown / older generation: conservative.
    return dict(tm=256, vmem=48 * 1024 * 1024, single_buffer=False)


def _maybe_single_buffered(shape, index_map, single):
    # Block index is constant along f -> a single VMEM buffer suffices.
    if single and hasattr(pl, "Buffered"):
        try:
            return pl.BlockSpec(shape, index_map, pipeline_mode=pl.Buffered(1))
        except TypeError:
            pass
    return pl.BlockSpec(shape, index_map)


# ---------------------------------------------------------------------------
# One-time parameter preparation (padding + W1/Wg fusion), done at init.
# ---------------------------------------------------------------------------

class FFNParams(NamedTuple):
    w1g: jax.Array   # (nF, Dp, 2*TF)  per-f-tile [W1 | Wg] slab
    b1g: jax.Array   # (nF, 1, 2*TF)   per-f-tile [b1 | bg]
    w2: jax.Array    # (Fp, Dp)
    b2: jax.Array    # (1, Dp)


def prepare_params(raw_params, *, tf=512, dtype=None):
    """Pad to lane-dense multiples of 128 / TF and fuse W1 & Wg per d_ff tile.

    Runs once at init; production should pass dtype=jnp.bfloat16 so the MXU
    runs at native throughput and weight HBM bytes are halved.
    """
    w1, b1, wg, bg, w2, b2 = raw_params
    if dtype is not None:
        w1, b1, wg, bg, w2, b2 = (a.astype(dtype) for a in (w1, b1, wg, bg, w2, b2))
    D, F = w1.shape
    Dp = _round_up(D, 128)
    TF = min(tf, _round_up(F, 128))
    Fp = _round_up(F, TF)
    nF = Fp // TF

    if (Dp, Fp) != (D, F):          # padded cols/rows are zero -> exact result
        w1 = jnp.pad(w1, ((0, Dp - D), (0, Fp - F)))
        wg = jnp.pad(wg, ((0, Dp - D), (0, Fp - F)))
        w2 = jnp.pad(w2, ((0, Fp - F), (0, Dp - D)))
    if Fp != F:
        b1 = jnp.pad(b1, ((0, 0), (0, Fp - F)))
        bg = jnp.pad(bg, ((0, 0), (0, Fp - F)))
    if Dp != D:
        b2 = jnp.pad(b2, ((0, 0), (0, Dp - D)))

    # Interleave per-TF tiles so one DMA stream + one MXU pass covers W1 and Wg.
    w1g = jnp.concatenate([w1.reshape(Dp, nF, TF), wg.reshape(Dp, nF, TF)], axis=-1)
    w1g = jnp.transpose(w1g, (1, 0, 2))          # (nF, Dp, 2*TF)
    b1g = jnp.concatenate([b1.reshape(1, nF, TF), bg.reshape(1, nF, TF)], axis=-1)
    b1g = jnp.transpose(b1g, (1, 0, 2))          # (nF, 1, 2*TF)
    return FFNParams(w1g=w1g, b1g=b1g, w2=w2, b2=b2)


# ---------------------------------------------------------------------------
# Wrapper.
# ---------------------------------------------------------------------------

def feed_forward_pallas(x2d, params: FFNParams, *, config=None):
    """x2d: (M, d_model) -> (M, d_model)."""
    cfg = config or _device_config()
    M, D = x2d.shape
    nF, Dp, two_tf = params.w1g.shape
    TF = two_tf // 2
    Fp = params.w2.shape[0]
    assert params.w2.shape == (Fp, Dp) and nF * TF == Fp

    out_dtype = x2d.dtype
    compute_dtype = params.w1g.dtype

    TM = min(cfg["tm"], _round_up(M, 8))
    # Keep >= 2 row tiles whenever possible so megacore / both v7x TCs stay busy.
    if M > 8 and _round_up(M, TM) // TM < 2:
        TM = _round_up((M + 1) // 2, 8)
    Mp = _round_up(M, TM)
    # TODO(synk): for tiny decode shapes (M <= 8) split the Dp output columns
    # over a second parallel grid axis so the second v7x TensorCore is not idle.

    xm = x2d if x2d.dtype == compute_dtype else x2d.astype(compute_dtype)
    if (Mp, Dp) != (M, D):
        xm = jnp.pad(xm, ((0, Mp - M), (0, Dp - D)))

    grid = (Mp // TM, nF)
    acc_in_out = out_dtype == jnp.float32
    kernel = _ffn_kernel_acc_in_out if acc_in_out else _ffn_kernel_scratch_acc
    scratch = [] if acc_in_out else [pltpu.VMEM((TM, Dp), jnp.float32)]

    act_b = xm.dtype.itemsize
    w_b = params.w1g.dtype.itemsize
    cost = pl.CostEstimate(
        flops=6 * Mp * Dp * Fp,
        transcendentals=Mp * Fp,
        bytes_accessed=Mp * Dp * (act_b + out_dtype.itemsize)
        + grid[0] * (3 * Dp * Fp + 2 * Fp + Dp) * w_b,
    )

    single = cfg.get("single_buffer", False)
    out = pl.pallas_call(
        kernel,
        out_shape=jax.ShapeDtypeStruct((Mp, Dp), out_dtype),
        grid_spec=pltpu.PrefetchScalarGridSpec(
            num_scalar_prefetch=0,
            grid=grid,
            in_specs=[
                # x row tile: resident across f (index depends only on m).
                _maybe_single_buffered((TM, Dp), lambda m, f: (m, 0), single),
                # fused [W1 | Wg] slab and bias, streamed along f.
                pl.BlockSpec((1, Dp, 2 * TF), lambda m, f: (f, 0, 0)),
                pl.BlockSpec((1, 1, 2 * TF), lambda m, f: (f, 0, 0)),
                # W2 d_ff slice, streamed along f.
                pl.BlockSpec((TF, Dp), lambda m, f: (f, 0)),
                # b2: resident.
                _maybe_single_buffered((1, Dp), lambda m, f: (0, 0), single),
            ],
            out_specs=pl.BlockSpec((TM, Dp), lambda m, f: (m, 0)),
            scratch_shapes=scratch,
        ),
        compiler_params=pltpu.CompilerParams(
            dimension_semantics=("parallel", "arbitrary"),
            vmem_limit_bytes=cfg["vmem"],
        ),
        cost_estimate=cost,
    )(xm, params.w1g, params.b1g, params.w2, params.b2)

    if (Mp, Dp) != (M, D):
        out = out[:M, :D]
    return out


def feed_forward(x, params: FFNParams, *, config=None):
    """x: (batch, seq, d_model) -> (batch, seq, d_model)."""
    B, S, D = x.shape
    out2d = feed_forward_pallas(x.reshape(B * S, D), params, config=config)
    return out2d.reshape(B, S, D)


# ---------------------------------------------------------------------------
# Raw (torch-Linear-equivalent) params + pure-JAX reference.
# ---------------------------------------------------------------------------

def init_params(key, d_model, d_ff, dtype=jnp.float32):
    ks = jax.random.split(key, 6)
    scale_in = 1.0 / jnp.sqrt(d_model)
    scale_ff = 1.0 / jnp.sqrt(d_ff)
    w1 = jax.random.normal(ks[0], (d_model, d_ff), dtype) * scale_in
    b1 = jax.random.normal(ks[1], (1, d_ff), dtype) * scale_in
    wg = jax.random.normal(ks[2], (d_model, d_ff), dtype) * scale_in
    bg = jax.random.normal(ks[3], (1, d_ff), dtype) * scale_in
    w2 = jax.random.normal(ks[4], (d_ff, d_model), dtype) * scale_ff
    b2 = jax.random.normal(ks[5], (1, d_model), dtype) * scale_ff
    return (w1, b1, wg, bg, w2, b2)


def feed_forward_ref(x, raw_params):
    w1, b1, wg, bg, w2, b2 = raw_params
    h = x @ w1 + b1[0]
    g = x @ wg + bg[0]
    return (h * (g * jax.nn.sigmoid(g))) @ w2 + b2[0]


if __name__ == "__main__":
    # Small shapes consistent with the module's forward: (batch, seq, d_model),
    # scaled down from d_model=4096.  d_ff follows the module's 2/3*4*d_model
    # rule.  d_model=120 / d_ff~320 exercise both the D (120->128) and F
    # (->384) lane-padding paths, and tf=128 gives multiple f accumulation steps.
    batch, seq, d_model_s = 2, 8, 120
    d_ff_s = int(2 / 3 * 4 * d_model_s)

    key = jax.random.PRNGKey(0)
    k_x, k_p = jax.random.split(key)
    x = jax.random.normal(k_x, (batch, seq, d_model_s), jnp.float32)
    raw = init_params(k_p, d_model_s, d_ff_s)
    ref = feed_forward_ref(x, raw)

    # f32 path: params prepared once, accumulate-into-output kernel variant.
    params_f32 = prepare_params(raw, tf=128)
    out = feed_forward(x, params_f32)
    out = jax.block_until_ready(out)
    assert out.shape == x.shape
    assert jnp.allclose(out, ref, atol=2e-3, rtol=2e-3), float(
        jnp.max(jnp.abs(out - ref)))

    # bf16 production config: bf16 weights + activations, f32 scratch accumulator.
    params_bf16 = prepare_params(raw, tf=128, dtype=jnp.bfloat16)
    out_bf16 = feed_forward(x.astype(jnp.bfloat16), params_bf16)
    out_bf16 = jax.block_until_ready(out_bf16)
    assert out_bf16.shape == x.shape
    assert float(jnp.max(jnp.abs(out_bf16.astype(jnp.float32) - ref))) < 0.3

    print("KERNEL_OK")
</pallas_src>

<mosaic_0001>
module attributes {stable_mosaic.version = 11 : i64} {
  func.func @_ffn_kernel_acc_in_out(%arg0: i32, %arg1: i32, %arg2: memref<8x128xf32, #tpu.memory_space<vmem>>, %arg3: memref<1x128x256xf32, #tpu.memory_space<vmem>>, %arg4: memref<1x1x256xf32, #tpu.memory_space<vmem>>, %arg5: memref<128x128xf32, #tpu.memory_space<vmem>>, %arg6: memref<1x128xf32, #tpu.memory_space<vmem>>, %arg7: memref<8x128xf32, #tpu.memory_space<vmem>>) attributes {dimension_semantics = [#tpu.dimension_semantics<parallel>, #tpu.dimension_semantics<arbitrary>], iteration_bounds = array<i64: 2, 3>, scalar_prefetch = 0 : i64, scratch_operands = 0 : i64, tpu.core_type = #tpu.core_type<tc>, window_params = [{transform_indices = @transform_0, window_bounds = array<i64: 8, 128>}, {transform_indices = @transform_1, window_bounds = array<i64: 1, 128, 256>}, {transform_indices = @transform_2, window_bounds = array<i64: 1, 1, 256>}, {transform_indices = @transform_3, window_bounds = array<i64: 128, 128>}, {pipeline_mode = #tpu.pipeline_mode<synchronous>, transform_indices = @transform_4, window_bounds = array<i64: 1, 128>}, {transform_indices = @transform_5, window_bounds = array<i64: 8, 128>}]} {
    %c0_i32 = arith.constant 0 : i32
    %0 = arith.cmpi eq, %arg1, %c0_i32 : i32
    %1 = arith.extui %0 : i1 to i32
    %c0_i32_0 = arith.constant 0 : i32
    %2 = arith.cmpi ne, %1, %c0_i32_0 : i32
    scf.if %2 {
      %cst_17 = arith.constant 0.000000e+00 : f32
      %28 = vector.broadcast %cst_17 : f32 to vector<8x128xf32>
      %c0_18 = arith.constant 0 : index
      %c0_19 = arith.constant 0 : index
      %29 = vector.load %arg7[%c0_18, %c0_19] : memref<8x128xf32, #tpu.memory_space<vmem>>, vector<8x128xf32>
      tpu.vector_store %arg7[%c0_18, %c0_19], %28 {strides = array<i32>} : memref<8x128xf32, #tpu.memory_space<vmem>>, vector<8x128xf32>,
    } else {
    }
    %c0 = arith.constant 0 : index
    %c0_1 = arith.constant 0 : index
    %3 = vector.load %arg2[%c0, %c0_1] : memref<8x128xf32, #tpu.memory_space<vmem>>, vector<8x128xf32>
    %c0_2 = arith.constant 0 : index
    %c0_3 = arith.constant 0 : index
    %c0_4 = arith.constant 0 : index
    %4 = vector.load %arg3[%c0_2, %c0_3, %c0_4] : memref<1x128x256xf32, #tpu.memory_space<vmem>>, vector<1x128x256xf32>
    %5 = vector.shape_cast %4 : vector<1x128x256xf32> to vector<128x256xf32>
    %cst = arith.constant dense<0.000000e+00> : vector<8x256xf32>
    %6 = tpu.matmul %3, %5, %cst {dimension_numbers = #tpu.dot_dimension_numbers<[1], [0], [0], [1], [0, 0, 1, 1], [], []>} : vector<8x128xf32>, vector<128x256xf32>, vector<8x256xf32> -> vector<8x256xf32>
    %c0_5 = arith.constant 0 : index
    %c0_6 = arith.constant 0 : index
    %c0_7 = arith.constant 0 : index
    %7 = vector.load %arg4[%c0_5, %c0_6, %c0_7] : memref<1x1x256xf32, #tpu.memory_space<vmem>>, vector<1x1x256xf32>
    %8 = vector.shape_cast %7 : vector<1x1x256xf32> to vector<1x256xf32>
    %9 = vector.broadcast %8 : vector<1x256xf32> to vector<8x256xf32>
    %10 = arith.addf %6, %9 : vector<8x256xf32>
    %11 = vector.extract_strided_slice %10 {offsets = [0, 0], sizes = [8, 128], strides = [1, 1]} : vector<8x256xf32> to vector<8x128xf32>
    %12 = vector.extract_strided_slice %10 {offsets = [0, 128], sizes = [8, 128], strides = [1, 1]} : vector<8x256xf32> to vector<8x128xf32>
    %13 = arith.negf %12 : vector<8x128xf32>
    %14 = math.exp %13 : vector<8x128xf32>
    %cst_8 = arith.constant 1.000000e+00 : f32
    %15 = vector.broadcast %cst_8 : f32 to vector<8x128xf32>
    %16 = arith.addf %15, %14 : vector<8x128xf32>
    %17 = arith.divf %15, %16 : vector<8x128xf32>
    %18 = arith.mulf %12, %17 : vector<8x128xf32>
    %19 = arith.mulf %11, %18 : vector<8x128xf32>
    %c0_9 = arith.constant 0 : index
    %c0_10 = arith.constant 0 : index
    %20 = vector.load %arg7[%c0_9, %c0_10] : memref<8x128xf32, #tpu.memory_space<vmem>>, vector<8x128xf32>
    %c0_11 = arith.constant 0 : index
    %c0_12 = arith.constant 0 : index
    %21 = vector.load %arg5[%c0_11, %c0_12] : memref<128x128xf32, #tpu.memory_space<vmem>>, vector<128x128xf32>
    %cst_13 = arith.constant dense<0.000000e+00> : vector<8x128xf32>
    %22 = tpu.matmul %19, %21, %cst_13 {dimension_numbers = #tpu.dot_dimension_numbers<[1], [0], [0], [1], [0, 0, 1, 1], [], []>} : vector<8x128xf32>, vector<128x128xf32>, vector<8x128xf32> -> vector<8x128xf32>
    %23 = arith.addf %20, %22 : vector<8x128xf32>
    %c0_14 = arith.constant 0 : index
    %c0_15 = arith.constant 0 : index
    %24 = vector.load %arg7[%c0_14, %c0_15] : memref<8x128xf32, #tpu.memory_space<vmem>>, vector<8x128xf32>
    tpu.vector_store %arg7[%c0_14, %c0_15], %23 {strides = array<i32>} : memref<8x128xf32, #tpu.memory_space<vmem>>, vector<8x128xf32>,
    %c2_i32 = arith.constant 2 : i32
    %25 = arith.cmpi eq, %arg1, %c2_i32 : i32
    %26 = arith.extui %25 : i1 to i32
    %c0_i32_16 = arith.constant 0 : i32
    %27 = arith.cmpi ne, %26, %c0_i32_16 : i32
    scf.if %27 {
      %c0_17 = arith.constant 0 : index
      %c0_18 = arith.constant 0 : index
      %28 = vector.load %arg7[%c0_17, %c0_18] : memref<8x128xf32, #tpu.memory_space<vmem>>, vector<8x128xf32>
      %c0_19 = arith.constant 0 : index
      %c0_20 = arith.constant 0 : index
      %29 = vector.load %arg6[%c0_19, %c0_20] : memref<1x128xf32, #tpu.memory_space<vmem>>, vector<1x128xf32>
      %30 = vector.broadcast %29 : vector<1x128xf32> to vector<8x128xf32>
      %31 = arith.addf %28, %30 : vector<8x128xf32>
      %c0_21 = arith.constant 0 : index
      %c0_22 = arith.constant 0 : index
      %32 = vector.load %arg7[%c0_21, %c0_22] : memref<8x128xf32, #tpu.memory_space<vmem>>, vector<8x128xf32>
      tpu.vector_store %arg7[%c0_21, %c0_22], %31 {strides = array<i32>} : memref<8x128xf32, #tpu.memory_space<vmem>>, vector<8x128xf32>,
    } else {
    }
    return
  }
  func.func @transform_0(%arg0: i32, %arg1: i32) -> (i32, i32) {
    %c0_i32 = arith.constant 0 : i32
    %c0_i32_0 = arith.constant 0 : i32
    return %arg0, %c0_i32 : i32, i32
  }
  func.func @transform_1(%arg0: i32, %arg1: i32) -> (i32, i32, i32) {
    %c0_i32 = arith.constant 0 : i32
    %c0_i32_0 = arith.constant 0 : i32
    %c0_i32_1 = arith.constant 0 : i32
    return %arg1, %c0_i32, %c0_i32_0 : i32, i32, i32
  }
  func.func @transform_2(%arg0: i32, %arg1: i32) -> (i32, i32, i32) {
    %c0_i32 = arith.constant 0 : i32
    %c0_i32_0 = arith.constant 0 : i32
    %c0_i32_1 = arith.constant 0 : i32
    return %arg1, %c0_i32, %c0_i32_0 : i32, i32, i32
  }
  func.func @transform_3(%arg0: i32, %arg1: i32) -> (i32, i32) {
    %c0_i32 = arith.constant 0 : i32
    %c0_i32_0 = arith.constant 0 : i32
    return %arg1, %c0_i32 : i32, i32
  }
  func.func @transform_4(%arg0: i32, %arg1: i32) -> (i32, i32) {
    %c0_i32 = arith.constant 0 : i32
    %c0_i32_0 = arith.constant 0 : i32
    %c0_i32_1 = arith.constant 0 : i32
    return %c0_i32, %c0_i32_0 : i32, i32
  }
  func.func @transform_5(%arg0: i32, %arg1: i32) -> (i32, i32) {
    %c0_i32 = arith.constant 0 : i32
    %c0_i32_0 = arith.constant 0 : i32
    return %arg0, %c0_i32 : i32, i32
  }
}

</mosaic_0001>

<bundles_post_ra>
// kernel: tpu_custom_call.1
= control target key start
LH: loop header
LB: loop body
LE: loop exit
PB: predicated region body
PF: predicated region fallthrough
CT: control target
= control target key end

     0   :  { %s1459_s0 = inlined_call_operand.hbm [shape: f32[16,128], index: 0, kind: input, shape index: {}]   ;;  %s1460_s1 = inlined_call_operand.hbm [shape: f32[3,128,256], index: 1, kind: input, shape index: {}]   ;;  %s1461_s2 = inlined_call_operand.hbm [shape: f32[3,1,256], index: 2, kind: input, shape index: {}]   ;;  %s1462_s3 = inlined_call_operand.hbm [shape: f32[384,128], index: 3, kind: input, shape index: {}]   ;;  %s1463_s4 = inlined_call_operand.vmem [shape: f32[1,128], index: 4, kind: input, shape index: {}]   ;;  %s1464_s5 = inlined_call_operand.hbm [shape: f32[16,128], index: 5, kind: output, shape index: {}]  }
   0x1   :  { %1478 = sst [smem:[#allocation27_spill]] %s1459_s0 }
   0x2   :  { %1479 = sst [smem:[#allocation28_spill]] %s1460_s1 }
   0x3   :  { %1480 = sst [smem:[#allocation29_spill]] %s1463_s4 }
   0x4   :  { %1481 = sst [smem:[#allocation30_spill]] %s1464_s5 }
   0x5   :  { %10 = vsyncpa [#allocation3], 0 }
   0x6   :  { %12 = vsyncpa [#allocation3 + $0x1], 0 }
   0x7   :  { %13 = vsyncpa [#allocation6], 0 }
   0x8   :  { %15 = vsyncpa [#allocation6 + $0x1], 0 }
   0x9   :  { %16 = vsyncpa [#allocation9], 0 }
   0xa   :  { %18 = vsyncpa [#allocation9 + $0x1], 0 }
   0xb   :  { %19 = vsyncpa [#allocation4], 0 }
   0xc   :  { %21 = vsyncpa [#allocation4 + $0x1], 0  ;;  %s1136_s18 = smov 0   ;;  %s1138_s19 = smov 0  }
   0xd   :  { %s1140_s20 = smov 0   ;;  %s1142_s21 = smov 0  }
   0xe   :  { %s1144_s22 = smov 0   ;;  %s1146_s23 = smov 0  }
   0xf   :  { %s1148_s24 = smov 0   ;;  %s1150_s25 = smov 0  }
  0x10   :  { %s1152_s26 = smov 0   ;;  %s1154_s27 = smov 0  }
  0x11   :  { %s1156_s28 = smov 0  }
  0x12 LB: > { %1482 = sst [smem:[#allocation15_spill]] %s1067_s20  ;;  %p54_p0 = scmp.eq.s32.totalorder %s1099_s28, 0  ;;  %s1099_s28 = sphi %s1156_s28, %s27_s28   ;;  %s1095_s27 = sphi %s1154_s27, %s1517_s27   ;;  %s1091_s26 = sphi %s1152_s26, %s1523_s26   ;;  %s1087_s25 = sphi %s1150_s25, %s1515_s25   ;;  %s1083_s24 = sphi %s1148_s24, %s1522_s24   ;;  %s1079_s23 = sphi %s1146_s23, %s1514_s23   ;;  %s1075_s22 = sphi %s1144_s22, %s1521_s22   ;;  %s1071_s21 = sphi %s1142_s21, %s1520_s21   ;;  %s1067_s20 = sphi %s1140_s20, %s1512_s20   ;;  %s1063_s19 = sphi %s1138_s19, %s1519_s19   ;;  %s1059_s18 = sphi %s1136_s18, %s1518_s18  }
  0x13   : > { %1483 = sst [smem:[#allocation16_spill]] %s1071_s21  ;;  %s72_s29 = sadd.s32 1, %s1067_s20 }
  0x14   : > { %1484 = sst [smem:[#allocation17_spill]] %s1079_s23  ;;  %p79_p1 = scmp.ne.s32.totalorder %s1067_s20, %s1063_s19 }
  0x15   : > { %1485 = sst [smem:[#allocation18_spill]] %s1087_s25  ;;  %p1466_p2 = scmp.lt.s32.totalorder %s1099_s28, 6 }
  0x16   : > { %1486 = sst [smem:[#allocation19_spill]] %s1095_s27  ;;  %s230_s30 = sand.u32 1, %s1099_s28  }
  0x17   : > { %1487 = sst [smem:[#allocation20_spill]] %s1099_s28  ;;  %p81_p3 = por %p79_p1, %p54_p0 }
  0x18   : > { %s1200_s6 = sand.u32 1, %s1067_s20   ;;  %s720_s7 = sshll.u32 %s1091_s26, 8 }
  0x19   : > { %s699_s8 = sshll.u32 %s1200_s6, 8  ;;  %s1488_s1 = sld [smem:[#allocation28_spill]] }
  0x1a   : > { %s234_s13 = scalar_lea.vmem [#allocation5], %s699_s8  ;;  %p1209_p4 = pnand %p1466_p2, %p81_p3 }
  0x1b   : > { %s242_s14 = sshll.u32 %s234_s13, 4  ;;  %p707_p5 = scmp.ge.s32.totalorder %s1099_s28, 1  ;;  %s243_s14 = int_to_ptr.vmem [resolvable:$true] %s242_s14 }
  0x1c   : > { %s1214_s16 = scalar_lea.sflag [#allocation6], %s230_s30  ;;  %s1101_s17 = smov 256  }
  0x1d   : > { %p291_p6 = scmp.lt.s32.totalorder %s1099_s28, 7  ;;  %s1225_s9 = sadd.s32 4294967295, %s1099_s28  }
  0x1e   : > { %s694_s30 = sadd.s32 4294967294, %s1099_s28   ;;  %s36_s10 = sadd.s32 1, %s1091_s26 }
  0x1f   : > { %s239_s11 = scalar_lea.hbm %s1488_s1, %s720_s7  ;;  %s1102_s7 = smov 16  }
  0x20   : > { %s240_s12 = sshll.u32 %s239_s11, 4  ;;  %p1220_p7 = pnand %p707_p5, %p291_p6  ;;  %s241_s12 = int_to_ptr.hbm [resolvable:$true] %s240_s12 }
  0x21   : > { %738 = dma.hbm_to_vmem [thread:$0]  (!%p1209_p4), %s241_s12, 4096, %s243_s14, %s1214_s16, %s1101_s17, %s1101_s17, %s1102_s7  }
  0x22   : > { %s39_s11 = sadd.s32 1, %s1095_s27  ;;  %p37_p8 = scmp.ge.s32.totalorder %s36_s10, 3 }
  0x23   : > { %s46_s12 = sadd.s32 1, %s1079_s23  ;;  %p53_p9 = scmp.ne.s32.totalorder %s1079_s23, %s1075_s22 }
  0x24   : > { %p59_p10 = scmp.ne.s32.totalorder %s1075_s22, %s1071_s21  ;;  %s1525_s10 = smov (%p37_p8, %s36_s10), 0 }
  0x25   : > { %1491 = sst [smem:[#allocation21_spill]] %s1525_s10  ;;  %s1527_s11 = smov (!%p37_p8, %s39_s11), %s1095_s27 }
  0x26   : > { %p1243_p11 = por %p54_p0, %p53_p9  ;;  %p60_p12 = scmp.eq.s32.totalorder %s1225_s9, 0 }
  0x27   : > { %p41_p13 = scmp.ge.s32.totalorder %s1527_s11, 2  ;;  %s69_s14 = ssub.s32 %s1091_s26, %s1525_s10 }
  0x28   : > { %p1253_p1 = por %p60_p12, %p59_p10  ;;  %p70_p3 = scmp.eq.s32.totalorder %s69_s14, 0 }
  0x29   : > { %s1529_s11 = smov (%p41_p13, %s1527_s11), 0  ;;  %p85_p0 = scmp.ne.s32.totalorder %s1063_s19, %s1059_s18 }
  0x2a   : > { %1494 = sst [smem:[#allocation22_spill]] %s1529_s11  ;;  %s43_s1 = ssub.s32 %s1095_s27, %s1529_s11 }
  0x2b   : > { %s1262_s7 = scalar_select %p70_p3, %s1067_s20, %s72_s29  }
  0x2c   : > { %p44_p5 = scmp.eq.s32.totalorder %s43_s1, 0  ;;  %p182_p6 = scmp.eq.s32.totalorder %s1225_s9, 5 }
  0x2d   : > { %1495 = sst [smem:[#allocation23_spill]] %s1262_s7  ;;  %p1269_p8 = por %p85_p0, %p60_p12 }
  0x2e   : > { %p188_p2 = scmp.eq.s32.totalorder %s694_s30, 5  ;;  %p1279_p13 = por %p182_p6, %p53_p9 }
  0x2f   : > { %s1274_s14 = scalar_select %p44_p5, %s1079_s23, %s46_s12  }
  0x30   : > { %s1498_s5 = scalar_select %p1279_p13, 1, 0 }
  0x31   : > { %1497 = sst [smem:[#allocation24_spill]] %s1274_s14  ;;  %p1286_p3 = por %p188_p2, %p59_p10 }
  0x32   : > { %1499 = sst [smem:[#allocation25_spill]] %s1498_s5  ;;  %s211_s18 = sand.u32 1, %s1079_s23  }
  0x33   : > { %s1500_s1 = scalar_select %p1286_p3, 1, 0 }
  0x34   : > { %s698_s29 = sshll.u32 %s1095_s27, 3  ;;  %s697_s11 = sshll.u32 %s211_s18, 3 }
  0x35   : > { %1501 = sst [smem:[#allocation26_spill]] %s1500_s1  ;;  %s215_s12 = scalar_lea.vmem [#allocation2], %s697_s11 }
  0x36   : > { %s1502_s0 = sld [smem:[#allocation27_spill]]  ;;  %s223_s14 = sshll.u32 %s215_s12, 4  ;;  %s224_s14 = int_to_ptr.vmem [resolvable:$true] %s223_s14 }
  0x37   : > { %p1503_p2 = scmp.lt.s32.totalorder %s1099_s28, 6  ;;  %s702_s1 = sshll.u32 %s1200_s6, 1 }
  0x38   : > { %s703_s23 = sshll.u32 %s1091_s26, 1  ;;  %s212_s20 = scalar_lea.sflag [#allocation3], %s211_s18 }
  0x39   : > { %p733_p9 = pnand %p1503_p2, %p1243_p11  ;;  %s260_s5 = scalar_lea.hbm %s1461_s2, %s703_s23 }
  0x3a   : > { %s256_s7 = scalar_lea.vmem [#allocation7], %s702_s1  ;;  %s704_s13 = sshll.u32 %s1200_s6, 7 }
  0x3b   : > { %s264_s11 = sshll.u32 %s256_s7, 4  ;;  %s275_s4 = scalar_lea.vmem [#allocation8], %s704_s13  ;;  %s265_s11 = int_to_ptr.vmem [resolvable:$true] %s264_s11 }
  0x3c   : > { %s219_s25 = scalar_lea.hbm %s1502_s0, %s698_s29  ;;  %s721_s29 = sshll.u32 %s1091_s26, 7 }
  0x3d   : > { %s221_s30 = sshll.u32 %s219_s25, 4  ;;  %s262_s25 = sshll.u32 %s260_s5, 4  ;;  %s222_s30 = int_to_ptr.hbm [resolvable:$true] %s221_s30  ;;  %s263_s25 = int_to_ptr.hbm [resolvable:$true] %s262_s25 }
  0x3e   : > { %735 = dma.hbm_to_vmem [thread:$0]  (!%p733_p9), %s222_s30, 128, %s224_s14, %s212_s20  }
  0x3f   : > { %741 = dma.hbm_to_vmem [thread:$0]  (!%p1209_p4), %s263_s25, 32, %s265_s11, %s1214_s16  }
  0x40   : > { %s280_s28 = scalar_lea.hbm %s1462_s3, %s721_s29  ;;  %s283_s21 = sshll.u32 %s275_s4, 4  ;;  %s284_s21 = int_to_ptr.vmem [resolvable:$true] %s283_s21 }
  0x41   : > { %s281_s23 = sshll.u32 %s280_s28, 4  ;;  %s272_s27 = scalar_lea.sflag [#allocation9], %s1200_s6  ;;  %s282_s23 = int_to_ptr.hbm [resolvable:$true] %s281_s23 }
  0x42   : > { %s1103_s5 = smov 128   ;;  %s1104_s14 = smov 8  }
  0x43   : > { %744 = dma.hbm_to_vmem [thread:$0]  (!%p1209_p4), %s282_s23, 2048, %s284_s21, %s272_s27, %s1103_s5, %s1103_s5, %s1104_s14  }
  0x44   : > { %295 = sbr.rel (%p1220_p7) target bundleno = 449 (0x1c1), region = 40  ;;  %s1318_s16 = sand.u32 (!%p1220_p7), 1, %s1075_s22  }
  0x45   : > { %s708_s0 = sshll.u32 (!%p1220_p7), %s1318_s16, 3  ;;  %s298_s1 = scalar_lea.sflag (!%p1220_p7), [#allocation3], %s1318_s16 }
  0x46   : > { %s1322_s4 = scalar_lea.vmem (!%p1220_p7), [#allocation2], %s708_s0 }
  0x49   : > { %1042 = dma.done.wait (%p1253_p1), %s298_s1, 128  }
  0x4a   : > { %1044 = vsyncadd (%p1253_p1), %s298_s1, 4294967168  ;;  %s307_s28 = sand.u32 1, %s1225_s9   ;;  %s309_s6 = sand.u32 1, %s1063_s19  }
  0x4b   : > { %s709_s15 = sshll.u32 %s309_s6, 8  ;;  %s308_s8 = scalar_lea.sflag [#allocation6], %s307_s28 }
  0x4c   : > { %s1330_s18 = scalar_lea.vmem [#allocation5], %s709_s15 }
  0x4d   : > { %1046 = dma.done.wait (%p1269_p8), %s308_s8, 4128  }
  0x4e   : > { %1048 = vsyncadd (%p1269_p8), %s308_s8, 4294963168  ;;  %s710_s30 = sshll.u32 %s309_s6, 1  ;;  %s711_s20 = sshll.u32 %s309_s6, 7 }
  0x4f   : > { %s1336_s25 = scalar_lea.vmem [#allocation7], %s710_s30  ;;  %s328_s17 = scalar_lea.sflag [#allocation9], %s309_s6 }
  0x50   : > { %s1338_s7 = scalar_lea.vmem [#allocation8], %s711_s20 }
  0x51   : > { %1050 = dma.done.wait (%p1269_p8), %s328_s17, 2048  }
  0x52   : > { %1052 = vsyncadd (%p1269_p8), %s328_s17, 4294965248  ;;  %s1344_s9 = scalar_lea.vmem [#allocation10], %s708_s0  ;;  %p713_p4 = scmp.ne.s32.totalorder %s1083_s24, 0 }
  0x54   : > { %378 = sbr.rel (%p713_p4) target bundleno = 91 (0x5b), region = 60 }
  0x59   : > { %v1105_v0 = vmov 0.0  }
  0x5a   : > { %379 = vst [vmem:[%s1344_s9] sm:$0xff] %v1105_v0 }
  0x5b PF: > { %v412_v1 = vld [vmem:[%s1330_s18 + $0xf8] sm:$0xff]  ;;  %v410_v2 = vld [vmem:[%s1330_s18 + $0xe8] sm:$0xff]  ;;  %v411_v5 = vld [vmem:[%s1330_s18 + $0xf0] sm:$0xff]  ;;  %p715_p7 = scmp.ne.s32.totalorder %s1083_s24, 2 }
  0x5c   : > { %439 = vmatpush.msra.mxu1 %v412_v1  ;;  %v408_v3 = vld [vmem:[%s1330_s18 + $0xd8] sm:$0xff]  ;;  %v406_v4 = vld [vmem:[%s1330_s18 + $0xc8] sm:$0xff]  ;;  %419 = vmatpush.msra.mxu0 %v411_v5  ;;  %v409_v7 = vld [vmem:[%s1330_s18 + $0xe0] sm:$0xff]  ;;  %s1504_s13 = sld [smem:[#allocation29_spill]] (!%p715_p7) }
  0x5d   : > { %v404_v6 = vld [vmem:[%s1330_s18 + $0xb8] sm:$0xff]  ;;  %v407_v8 = vld [vmem:[%s1330_s18 + $0xd0] sm:$0xff]  ;;  %v402_v9 = vld [vmem:[%s1330_s18 + $0xa8] sm:$0xff] }
  0x5e   : > { %440 = vmatpush.msra.mxu1 %v410_v2  ;;  %420 = vmatpush.msra.mxu0 %v409_v7  ;;  %v405_v10 = vld [vmem:[%s1330_s18 + $0xc0] sm:$0xff]  ;;  %v400_v11 = vld [vmem:[%s1330_s18 + $0x98] sm:$0xff]  ;;  %v403_v12 = vld [vmem:[%s1330_s18 + $0xb0] sm:$0xff] }
  0x5f   : > { %v398_v13 = vld [vmem:[%s1330_s18 + $0x88] sm:$0xff]  ;;  %v401_v14 = vld [vmem:[%s1330_s18 + $0xa0] sm:$0xff]  ;;  %v396_v15 = vld [vmem:[%s1330_s18 + $0x78] sm:$0xff] }
  0x60   : > { %441 = vmatpush.msra.mxu1 %v408_v3  ;;  %421 = vmatpush.msra.mxu0 %v407_v8  ;;  %v399_v16 = vld [vmem:[%s1330_s18 + $0x90] sm:$0xff]  ;;  %v394_v17 = vld [vmem:[%s1330_s18 + $0x68] sm:$0xff]  ;;  %v397_v18 = vld [vmem:[%s1330_s18 + $0x80] sm:$0xff] }
  0x61   : > { %v392_v19 = vld [vmem:[%s1330_s18 + $0x58] sm:$0xff]  ;;  %v395_v20 = vld [vmem:[%s1330_s18 + $0x70] sm:$0xff]  ;;  %v390_v21 = vld [vmem:[%s1330_s18 + $0x48] sm:$0xff] }
  0x62   : > { %442 = vmatpush.msra.mxu1 %v406_v4  ;;  %422 = vmatpush.msra.mxu0 %v405_v10  ;;  %v393_v22 = vld [vmem:[%s1330_s18 + $0x60] sm:$0xff]  ;;  %v388_v23 = vld [vmem:[%s1330_s18 + $0x38] sm:$0xff]  ;;  %v391_v24 = vld [vmem:[%s1330_s18 + $0x50] sm:$0xff] }
  0x63   : > { %v386_v25 = vld [vmem:[%s1330_s18 + $0x28] sm:$0xff]  ;;  %v389_v26 = vld [vmem:[%s1330_s18 + $0x40] sm:$0xff]  ;;  %v384_v27 = vld [vmem:[%s1330_s18 + $0x18] sm:$0xff] }
  0x64   : > { %443 = vmatpush.msra.mxu1 %v404_v6  ;;  %423 = vmatpush.msra.mxu0 %v403_v12  ;;  %v387_v28 = vld [vmem:[%s1330_s18 + $0x30] sm:$0xff]  ;;  %v382_v29 = vld [vmem:[%s1330_s18 + $0x8] sm:$0xff]  ;;  %v385_v31 = vld [vmem:[%s1330_s18 + $0x20] sm:$0xff] }
  0x65   : > { %v380_v30 = vld [vmem:[%s1322_s4] sm:$0xff]  ;;  %v381_v33 = vld [vmem:[%s1330_s18] sm:$0xff] }
  0x66   : > { %444 = vmatpush.msra.mxu1 %v402_v9  ;;  %424 = vmatpush.msra.mxu0 %v401_v14  ;;  %v383_v32 = vld [vmem:[%s1330_s18 + $0x10] sm:$0xff]  ;;  %v496_v34 = vld [vmem:[%s1338_s7 + $0x78] sm:$0xff]  ;;  %v493_v37 = vld [vmem:[%s1338_s7 + $0x60] sm:$0xff] }
  0x67   : > { %497 = vmatpush.msra.mxu2 %v496_v34  ;;  %v495_v35 = vld [vmem:[%s1338_s7 + $0x70] sm:$0xff]  ;;  %v494_v36 = vld [vmem:[%s1338_s7 + $0x68] sm:$0xff]  ;;  %v492_v38 = vld [vmem:[%s1338_s7 + $0x58] sm:$0xff] }
  0x68   : > { %445 = vmatpush.msra.mxu1 %v400_v11  ;;  %425 = vmatpush.msra.mxu0 %v399_v16  ;;  %v491_v39 = vld [vmem:[%s1338_s7 + $0x50] sm:$0xff]  ;;  %v490_v40 = vld [vmem:[%s1338_s7 + $0x48] sm:$0xff]  ;;  %v489_v41 = vld [vmem:[%s1338_s7 + $0x40] sm:$0xff] }
  0x69   : > { %498 = vmatpush.msra.mxu2 %v495_v35  ;;  %v488_v42 = vld [vmem:[%s1338_s7 + $0x38] sm:$0xff]  ;;  %v487_v43 = vld [vmem:[%s1338_s7 + $0x30] sm:$0xff]  ;;  %v486_v44 = vld [vmem:[%s1338_s7 + $0x28] sm:$0xff] }
  0x6a   : > { %446 = vmatpush.msra.mxu1 %v398_v13  ;;  %426 = vmatpush.msra.mxu0 %v397_v18  ;;  %v485_v45 = vld [vmem:[%s1338_s7 + $0x20] sm:$0xff]  ;;  %v413_v46 = vld [vmem:[%s1336_s25] sm:$0x3]  ;;  %v483_v49 = vld [vmem:[%s1338_s7 + $0x10] sm:$0xff] }
  0x6b   : > { %499 = vmatpush.msra.mxu2 %v494_v36  ;;  %v484_v47 = vld [vmem:[%s1338_s7 + $0x18] sm:$0xff]  ;;  %v416_v48 = vperm.slane %v413_v46, 1  ;;  %v482_v50 = vld [vmem:[%s1338_s7 + $0x8] sm:$0xff]  ;;  %v481_v51 = vld [vmem:[%s1338_s7] sm:$0xff]  ;;  %v415_v63 = vperm.slane %v413_v46, 0 }
  0x6c   : > { %447 = vmatpush.msra.mxu1 %v396_v15  ;;  %427 = vmatpush.msra.mxu0 %v395_v20  ;;  %v480_v8 = vld [vmem:[%s1344_s9] sm:$0xff] }
  0x6d   : > { %500 = vmatpush.msra.mxu2 %v493_v37 }
  0x6e   : > { %448 = vmatpush.msra.mxu1 %v394_v17  ;;  %428 = vmatpush.msra.mxu0 %v393_v22 }
  0x6f   : > { %501 = vmatpush.msra.mxu2 %v492_v38 }
  0x70   : > { %449 = vmatpush.msra.mxu1 %v392_v19  ;;  %429 = vmatpush.msra.mxu0 %v391_v24 }
  0x71   : > { %502 = vmatpush.msra.mxu2 %v491_v39 }
  0x72   : > { %450 = vmatpush.msra.mxu1 %v390_v21  ;;  %430 = vmatpush.msra.mxu0 %v389_v26 }
  0x73   : > { %503 = vmatpush.msra.mxu2 %v490_v40 }
  0x74   : > { %451 = vmatpush.msra.mxu1 %v388_v23  ;;  %431 = vmatpush.msra.mxu0 %v387_v28 }
  0x75   : > { %504 = vmatpush.msra.mxu2 %v489_v41 }
  0x76   : > { %452 = vmatpush.msra.mxu1 %v386_v25  ;;  %432 = vmatpush.msra.mxu0 %v385_v31 }
  0x77   : > { %505 = vmatpush.msra.mxu2 %v488_v42 }
  0x78   : > { %453 = vmatpush.msra.mxu1 %v384_v27  ;;  %433 = vmatpush.msra.mxu0 %v383_v32 }
  0x79   : > { %506 = vmatpush.msra.mxu2 %v487_v43 }
  0x7a   : > { %454 = vmatpush.msra.mxu1 %v382_v29  ;;  %434 = vmatpush.msra.mxu0 %v381_v33 }
  0x7b   : > { %455 = vmatmul.f32.vlgmr.msra.gmra.mxu1 %v380_v30  ;;  %435 = vmatmul.f32.vlgmr.msra.gmra.mxu0 %v380_v30 }
  0x7c   : > { %507 = vmatpush.msra.mxu2 %v486_v44 }
  0x7e   : > { %508 = vmatpush.msra.mxu2 %v485_v45 }
  0x80   : > { %509 = vmatpush.msra.mxu2 %v484_v47 }
  0x82   : > { %510 = vmatpush.msra.mxu2 %v483_v49 }
  0x84   : > { %511 = vmatpush.msra.mxu2 %v482_v50 }
  0x86   : > { %512 = vmatpush.msra.mxu2 %v481_v51 }
  0xf8   : > { %v456_v52 = vpop.f32.mrf.mxu1  ;;  %v436_v0 = vpop.f32.mrf.mxu0 }
  0xf9   : > { %v457_v53 = vadd.f32 %v456_v52, %v416_v48  ;;  %v437_v4 = vadd.f32 %v436_v0, %v415_v63 }
  0xfb   : > { %v714_v54 = vmul.f32 -1.442695, %v457_v53 }
  0xfd   : > { %844 = vpow2.f32 %v714_v54 }
 0x103   : > { %v845_v55 = vpop.eup %844 }
 0x104   : > { %v462_v56 = vadd.f32 1.0, %v845_v55 }
 0x106   : > { %846 = vrcp.f32 %v462_v56  ;;  %v474_v60 = vand.u32 2147483648, %v462_v56  ;;  %v472_v62 = vand.u32 2147483647, %v462_v56  ;;  %vm468_vm1 = vweird.f32 %v462_v56 }
 0x108   : > { %v475_v2 = vor.u32 1.1754944e-38, %v474_v60  ;;  %vm473_vm3 = vcmp.eq.f32.partialorder %v472_v62, 8.507059e+37 }
 0x10c   : > { %v847_v57 = vpop.eup %846 }
 0x10d   : > { %v464_v58 = vmul.f32 %v847_v57, %v462_v56  ;;  %vm469_vm0 = vweird.f32 %v847_v57 }
 0x10e   : > { %vm470_vm2 = vmor %vm468_vm1, %vm469_vm0 }
 0x10f   : > { %v465_v59 = vsub.f32 1.0, %v464_v58 }
 0x111   : > { %v466_v61 = vmul.f32 %v847_v57, %v465_v59 }
 0x113   : > { %v467_v1 = vadd.f32 %v847_v57, %v466_v61 }
 0x115   : > { %v471_v3 = vsel %vm470_vm2, %v847_v57, %v467_v1 }
 0x116   : > { %v476_v5 = vsel %vm473_vm3, %v475_v2, %v471_v3 }
 0x117   : > { %v478_v6 = vmul.f32 %v476_v5, %v457_v53 }
 0x119   : > { %v479_v7 = vmul.f32 %v478_v6, %v437_v4 }
 0x11b   : > { %513 = vmatmul.f32.vlgmr.msra.gmra.mxu2 %v479_v7 }
 0x19d   : > { %522 = sbr.rel (%p715_p7) target bundleno = 428 (0x1ac), region = 64 }
 0x19e   : > { %v514_v9 = vpop.f32.mrf.mxu2 }
 0x19f   : > { %v517_v10 = vadd.f32 %v514_v9, %v480_v8 }
 0x1a1   : > { %518 = vst [vmem:[%s1344_s9] sm:$0xff] %v517_v10 }
 0x1a2   : > { %v848_v12 = vld [vmem:[%s1504_s13] ss:$0 sm:$0xff] }
 0x1a8   : > { %v523_v11 = vld [vmem:[%s1344_s9] sm:$0xff] }
 0x1a9   : > { %v528_v13 = vadd.f32 %v848_v12, %v523_v11 }
 0x1ab   : > { %529 = vst [vmem:[%s1344_s9] sm:$0xff] %v528_v13 }
 0x1ac PF: > { %s1505_s29 = sld [smem:[#allocation18_spill]]  ;;  %s543_s14 = sshll.u32 %s1344_s9, 4  ;;  %s544_s14 = int_to_ptr.vmem [resolvable:$true] %s543_s14 }
 0x1ad   : > { %s1507_s5 = sld [smem:[#allocation30_spill]]  ;;  %s531_s1 = scalar_lea.sflag [#allocation4], %s1318_s16 }
 0x1b2   : > { %s717_s21 = sshll.u32 %s1505_s29, 3 }
 0x1b3   : > { %s541_s24 = scalar_lea.hbm %s1507_s5, %s717_s21  ;;  %s989_s8 = scalar_lea.hbm %s1507_s5, 16 }
 0x1b4   : > { %s545_s0 = sshll.u32 %s541_s24, 4  ;;  %s546_s0 = int_to_ptr.hbm [resolvable:$true] %s545_s0 }
 0x1b5   : > { %s983_s4 = sshra.s32 %s546_s0, 4  ;;  %s984_s4 = int_to_ptr.hbm [resolvable:$true] %s983_s4 }
 0x1b6   : > { %s985_s28 = scalar_lea.hbm %s984_s4, 8  ;;  %p990_p1 = scmp.lt.s32.totalorder %s984_s4, %s1507_s5 }
 0x1b7   : > { %p986_p10 = scmp.ne.s32.totalorder %s984_s4, %s985_s28  ;;  %p991_p0 = scmp.lt.s32.totalorder %s989_s8, %s985_s28 }
 0x1b9   : > { %p987_p11 = pnand %p986_p10, %p1279_p13  ;;  %p992_p5 = por %p991_p0, %p990_p1 }
 0x1bb   : > { %p988_p12 = pneg %p987_p11 }
 0x1bd   : > { %p993_p6 = pnand %p992_p5, %p988_p12 }
 0x1bf   : > { %996 = shalt.err (!%p993_p6)
}
 0x1c0   : > { %730 = dma.vmem_to_hbm [thread:$0]  (%p1279_p13), %s544_s14, 128, %s546_s0, %s531_s1  }
 0x1c1 PF: > { %s1508_s16 = sld [smem:[#allocation20_spill]] }
 0x1c2   : > { %s1509_s20 = sld [smem:[#allocation16_spill]] }
 0x1c7   : > { %p750_p8 = scmp.ge.s32.totalorder %s1508_s16, 2 }
 0x1c8   : > { %s557_s17 = sand.u32 1, %s1509_s20  }
 0x1c9   : > { %p746_p2 = pnand %p750_p8, %p1286_p3  ;;  %s558_s7 = scalar_lea.sflag [#allocation4], %s557_s17 }
 0x1cb   : > { %p747_p9 = pneg %p746_p2 }
 0x1cd   : > { %1054 = dma.done.wait (%p747_p9), %s558_s7, 128  }
 0x1ce   : > { %1056 = vsyncadd (%p747_p9), %s558_s7, 4294967168  ;;  %s27_s28 = sadd.s32 1, %s1508_s16   ;;  %s1511_s9 = sld [smem:[#allocation15_spill]] }
 0x1cf   : > { %p24_p4 = scmp.ge.s32.totalorder %s27_s28, 8   ;;  %s1512_s20 = sld [smem:[#allocation23_spill]] }
 0x1d0   : > { %s1513_s10 = sld [smem:[#allocation17_spill]]  ;;  %s1518_s18 = smov %s1063_s19 }
 0x1d1   : > { %s1514_s23 = sld [smem:[#allocation24_spill]]  ;;  %s1520_s21 = smov %s1075_s22 }
 0x1d2   : > { %s1515_s25 = sld [smem:[#allocation19_spill]]  ;;  %s1522_s24 = smov %s1091_s26 }
 0x1d3   : > { %s1516_s11 = sld [smem:[#allocation21_spill]] }
 0x1d4   : > { %s1517_s27 = sld [smem:[#allocation22_spill]]  ;;  %s1519_s19 = smov %s1511_s9 }
 0x1d5   :  { %26 = sbr.rel (!%p24_p4) target bundleno = 18 (0x12), region = 130 }
 0x1d6   : > { %s1521_s22 = smov %s1513_s10 }
 0x1d9   : > { %s1523_s26 = smov %s1516_s11 }
 0x1da   :  { %564 = vsyncpa [#allocation3], 1 }
 0x1db   :  { %566 = vsyncpa [#allocation3 + $0x1], 1 }
 0x1dc   :  { %567 = vsyncpa [#allocation6], 1 }
 0x1dd   :  { %569 = vsyncpa [#allocation6 + $0x1], 1 }
 0x1de   :  { %570 = vsyncpa [#allocation9], 1 }
 0x1df   :  { %572 = vsyncpa [#allocation9 + $0x1], 1 }
 0x1e0   :  { %573 = vsyncpa [#allocation4], 1 }
 0x1e1   :  { %575 = vsyncpa [#allocation4 + $0x1], 1 }

</bundles_post_ra>
